<compile_context>
chip_gen: v7x
topology: tpu7x:2x2x1
jax: 0.10.0
libtpu: 0.0.40
codegen_flags: <defaults>
</compile_context>

<pallas_src>
import functools
import math

import jax
import jax.numpy as jnp
from jax import lax
from jax.experimental import pallas as pl
from jax.experimental.pallas import tpu as pltpu


def _smoothstep_coeffs(N):
    # comb(N+n, n) * comb(2N+1, N-n) for n = 0..N  (trace-time Python ints)
    return [math.comb(N + n, n) * math.comb(2 * N + 1, N - n) for n in range(N + 1)]


def _aperture_kernel(f_ref, o_ref, amp_ref, *,
                     R, s, gridsize, x_shift, y_shift, n_order, T, H, W, TH):
    # f_ref / o_ref: (2, TH, W) float32 (re-plane, im-plane); amp_ref: (TH, W).
    # program_id must be read OUTSIDE the pl.when body (a program_id eqn inside
    # a cond branch is not substituted by the interpret lowering path).
    th = pl.program_id(0)
    b = pl.program_id(1)

    @pl.when(b == 0)
    def _compute_amp():
        row0 = th * TH
        iy = lax.broadcasted_iota(jnp.int32, (TH, W), 0) + row0
        ix = lax.broadcasted_iota(jnp.int32, (TH, W), 1)
        y_pix = iy.astype(jnp.float32)
        x_pix = ix.astype(jnp.float32)

        dy = (gridsize / (H - 1)) if H > 1 else 0.0     # guard H==1 / W==1
        dx = (gridsize / (W - 1)) if W > 1 else 0.0
        Y = (-gridsize / 2.0 + y_pix * dy) - y_shift
        X = (-gridsize / 2.0 + x_pix * dx) - x_shift

        r = jnp.sqrt(X * X + Y * Y)

        # SmoothStep(R - r, -s/2, s/2, n): t = clip(((R + s/2) - r) * (1/s), 0, 1)
        inv_s = 1.0 / s
        t = jnp.clip(((R + 0.5 * s) - r) * inv_s, 0.0, 1.0)

        # Horner form of sum_k c_k * (-t)^k, then * t^(n+1)
        coeffs = _smoothstep_coeffs(n_order)
        neg_t = -t
        poly = jnp.full(t.shape, float(coeffs[-1]), dtype=jnp.float32)
        for c in reversed(coeffs[:-1]):
            poly = poly * neg_t + float(c)
        smooth = poly * t ** (n_order + 1)
        smooth = jnp.maximum(smooth, 0.0)               # guard sqrt vs FP round-off
        if T != 1.0:
            smooth = smooth * T
        amp_ref[...] = jnp.sqrt(smooth)                 # == sqrt(T) * sqrt(smoothstep)

    # Broadcast the (TH, W) mask over the re/im plane axis.
    o_ref[...] = f_ref[...] * amp_ref[...][None, :, :]


@functools.partial(
    jax.jit,
    static_argnames=("gridsize", "R", "s", "x_shift", "y_shift", "n", "T", "row_tile"))
def smooth_edge_aperture(field, gridsize, R, s,
                         x_shift=0.0, y_shift=0.0, n=2, T=1.0, row_tile=None):
    """Pallas equivalent of SmoothEdgeAperture(R, s).forward(field, gridsize)."""
    field = field.astype(jnp.complex64)
    B, H, W = field.shape

    # Planar pack (B, 2, H, W) f32: one fused XLA pass (re/im extract + concat
    # along a major axis, no cross-lane shuffle); allow_input_fusion below lets
    # XLA fold it into the pallas_call operand so it never hits HBM.
    planar = jnp.stack([jnp.real(field), jnp.imag(field)], axis=1)

    # Row tile: ~4 MiB per (2, TH, W) f32 block (≈4.5 blocks live in VMEM),
    # multiple of 8 (or full H), and ≥2 row tiles whenever possible so the
    # 'parallel' axis feeds both v7x TensorCores.
    if row_tile is not None:
        TH = min(int(row_tile), H)
    else:
        tgt = (4 * 1024 * 1024) // (2 * W * 4)
        TH = min(H, max(1, tgt))
    if H >= 16:
        TH = min(TH, max(8, (pl.cdiv(H, 2) // 8) * 8))
    if TH < H:
        TH = max(8, (TH // 8) * 8)                      # (8,128) rule, 2nd-to-last dim
    n_row_tiles = pl.cdiv(H, TH)

    kernel = functools.partial(
        _aperture_kernel,
        R=float(R), s=float(s), gridsize=float(gridsize),
        x_shift=float(x_shift), y_shift=float(y_shift),
        n_order=int(n), T=float(T), H=H, W=W, TH=TH)

    # Batch block dim squeezed; kernel sees (2, TH, W).
    spec = pl.BlockSpec((None, 2, TH, W), lambda th, b: (b, 0, th, 0))

    out = pl.pallas_call(
        kernel,
        out_shape=jax.ShapeDtypeStruct((B, 2, H, W), jnp.float32),
        grid=(n_row_tiles, B),          # batch INNERMOST -> amp-scratch reuse valid
        in_specs=[spec],
        out_specs=spec,
        scratch_shapes=[pltpu.VMEM((TH, W), jnp.float32)],
        compiler_params=pltpu.CompilerParams(
            dimension_semantics=("parallel", "arbitrary"),
            allow_input_fusion=[True],
            vmem_limit_bytes=32 * 1024 * 1024),
    )(planar)

    # Unpack: contiguous plane slices + complex(), one fused XLA pass.
    return lax.complex(out[:, 0], out[:, 1])


def _reference(field, gridsize, R, s, x_shift=0.0, y_shift=0.0, n=2, T=1.0):
    # Pure-JAX reference mirroring the PyTorch semantics.
    B, H, W = field.shape
    y = jnp.linspace(-gridsize / 2, gridsize / 2, H, dtype=jnp.float32) - y_shift
    x = jnp.linspace(-gridsize / 2, gridsize / 2, W, dtype=jnp.float32) - x_shift
    Y, X = jnp.meshgrid(y, x, indexing="ij")
    arg = R - jnp.sqrt(X * X + Y * Y)
    t = jnp.clip((arg + s / 2) / s, 0.0, 1.0)
    res = jnp.zeros_like(t)
    for k, c in enumerate(_smoothstep_coeffs(n)):
        res = res + c * (-t) ** k
    smooth = jnp.maximum(res * t ** (n + 1), 0.0)
    amp = (T ** 0.5) * jnp.sqrt(smooth)
    return field * amp[None, :, :].astype(jnp.float32)


if __name__ == "__main__":
    key = jax.random.PRNGKey(0)

    # Test 1: small canonical shape; H=16 -> TH=8, exercises 2 row tiles.
    k1, k2 = jax.random.split(key)
    B, H, W = 2, 16, 16
    gridsize, R, s = 2.0, 0.7, 0.3
    fr = jax.random.normal(k1, (B, H, W), dtype=jnp.float32)
    fi = jax.random.normal(k2, (B, H, W), dtype=jnp.float32)
    field = (fr + 1j * fi).astype(jnp.complex64)

    out = jax.block_until_ready(smooth_edge_aperture(field, gridsize, R, s))
    ref = _reference(field, gridsize, R, s)
    assert jnp.all(jnp.isfinite(jnp.abs(out))), "non-finite output"
    assert jnp.allclose(out, ref, atol=3e-5, rtol=1e-5), "mismatch vs reference (test 1)"

    # Test 2: partial last row tile (H % TH != 0) + batch reuse of the amp scratch.
    k3, k4 = jax.random.split(k1)
    B2, H2, W2 = 3, 20, 16
    fr2 = jax.random.normal(k3, (B2, H2, W2), dtype=jnp.float32)
    fi2 = jax.random.normal(k4, (B2, H2, W2), dtype=jnp.float32)
    field2 = (fr2 + 1j * fi2).astype(jnp.complex64)

    out2 = jax.block_until_ready(
        smooth_edge_aperture(field2, gridsize, R, s, row_tile=8))
    ref2 = _reference(field2, gridsize, R, s)
    assert jnp.all(jnp.isfinite(jnp.abs(out2))), "non-finite output (test 2)"
    assert jnp.allclose(out2, ref2, atol=3e-5, rtol=1e-5), "mismatch vs reference (test 2)"

    print("KERNEL_OK")
</pallas_src>

<mosaic_0001>
module attributes {stable_mosaic.version = 11 : i64} {
  func.func @_aperture_kernel(%arg0: i32, %arg1: i32, %arg2: memref<1x2x8x16xf32, #tpu.memory_space<vmem>>, %arg3: memref<1x2x8x16xf32, #tpu.memory_space<vmem>>, %arg4: memref<8x16xf32, #tpu.memory_space<vmem>>) attributes {dimension_semantics = [#tpu.dimension_semantics<parallel>, #tpu.dimension_semantics<arbitrary>], iteration_bounds = array<i64: 2, 2>, scalar_prefetch = 0 : i64, scratch_operands = 1 : i64, tpu.core_type = #tpu.core_type<tc>, window_params = [{transform_indices = @transform_0, window_bounds = array<i64: 1, 2, 8, 16>}, {transform_indices = @transform_1, window_bounds = array<i64: 1, 2, 8, 16>}]} {
    %c0_i32 = arith.constant 0 : i32
    %0 = arith.cmpi eq, %arg1, %c0_i32 : i32
    %1 = arith.extui %0 : i1 to i32
    %c0_i32_0 = arith.constant 0 : i32
    %2 = arith.cmpi ne, %1, %c0_i32_0 : i32
    scf.if %2 {
      %c8_i32 = arith.constant 8 : i32
      %12 = arith.muli %arg0, %c8_i32 : i32
      %13 = tpu.iota {dimensions = array<i32: 0>} : vector<8x16xi32>
      %14 = vector.broadcast %12 : i32 to vector<8x16xi32>
      %15 = arith.addi %13, %14 : vector<8x16xi32>
      %16 = tpu.iota {dimensions = array<i32: 1>} : vector<8x16xi32>
      %17 = arith.sitofp %15 : vector<8x16xi32> to vector<8x16xf32>
      %18 = arith.sitofp %16 : vector<8x16xi32> to vector<8x16xf32>
      %cst = arith.constant 0.13333334 : f32
      %19 = vector.broadcast %cst : f32 to vector<8x16xf32>
      %20 = arith.mulf %17, %19 : vector<8x16xf32>
      %cst_10 = arith.constant -1.000000e+00 : f32
      %21 = vector.broadcast %cst_10 : f32 to vector<8x16xf32>
      %22 = arith.addf %21, %20 : vector<8x16xf32>
      %cst_11 = arith.constant 0.000000e+00 : f32
      %23 = vector.broadcast %cst_11 : f32 to vector<8x16xf32>
      %24 = arith.subf %22, %23 : vector<8x16xf32>
      %cst_12 = arith.constant 0.13333334 : f32
      %25 = vector.broadcast %cst_12 : f32 to vector<8x16xf32>
      %26 = arith.mulf %18, %25 : vector<8x16xf32>
      %cst_13 = arith.constant -1.000000e+00 : f32
      %27 = vector.broadcast %cst_13 : f32 to vector<8x16xf32>
      %28 = arith.addf %27, %26 : vector<8x16xf32>
      %cst_14 = arith.constant 0.000000e+00 : f32
      %29 = vector.broadcast %cst_14 : f32 to vector<8x16xf32>
      %30 = arith.subf %28, %29 : vector<8x16xf32>
      %31 = arith.mulf %30, %30 : vector<8x16xf32>
      %32 = arith.mulf %24, %24 : vector<8x16xf32>
      %33 = arith.addf %31, %32 : vector<8x16xf32>
      %34 = math.sqrt %33 : vector<8x16xf32>
      %cst_15 = arith.constant 8.500000e-01 : f32
      %35 = vector.broadcast %cst_15 : f32 to vector<8x16xf32>
      %36 = arith.subf %35, %34 : vector<8x16xf32>
      %cst_16 = arith.constant 3.33333325 : f32
      %37 = vector.broadcast %cst_16 : f32 to vector<8x16xf32>
      %38 = arith.mulf %36, %37 : vector<8x16xf32>
      %cst_17 = arith.constant 0.000000e+00 : f32
      %cst_18 = arith.constant 1.000000e+00 : f32
      %39 = vector.broadcast %cst_17 : f32 to vector<8x16xf32>
      %40 = arith.maximumf %39, %38 : vector<8x16xf32>
      %41 = vector.broadcast %cst_18 : f32 to vector<8x16xf32>
      %42 = arith.minimumf %41, %40 : vector<8x16xf32>
      %cst_19 = arith.constant 0.000000e+00 : f32
      %43 = vector.broadcast %cst_19 : f32 to vector<8x16xf32>
      %44 = arith.subf %43, %42 : vector<8x16xf32>
      %cst_20 = arith.constant 6.000000e+00 : f32
      %45 = vector.broadcast %cst_20 : f32 to vector<8x16xf32>
      %46 = arith.mulf %45, %44 : vector<8x16xf32>
      %cst_21 = arith.constant 1.500000e+01 : f32
      %47 = vector.broadcast %cst_21 : f32 to vector<8x16xf32>
      %48 = arith.addf %46, %47 : vector<8x16xf32>
      %49 = arith.mulf %48, %44 : vector<8x16xf32>
      %cst_22 = arith.constant 1.000000e+01 : f32
      %50 = vector.broadcast %cst_22 : f32 to vector<8x16xf32>
      %51 = arith.addf %49, %50 : vector<8x16xf32>
      %52 = arith.mulf %42, %42 : vector<8x16xf32>
      %53 = arith.mulf %42, %52 : vector<8x16xf32>
      %54 = arith.mulf %51, %53 : vector<8x16xf32>
      %cst_23 = arith.constant 0.000000e+00 : f32
      %55 = vector.broadcast %cst_23 : f32 to vector<8x16xf32>
      %56 = arith.maximumf %54, %55 : vector<8x16xf32>
      %57 = math.sqrt %56 : vector<8x16xf32>
      %c0_24 = arith.constant 0 : index
      %c0_25 = arith.constant 0 : index
      %58 = vector.load %arg4[%c0_24, %c0_25] : memref<8x16xf32, #tpu.memory_space<vmem>>, vector<8x16xf32>
      tpu.vector_store %arg4[%c0_24, %c0_25], %57 {strides = array<i32>} : memref<8x16xf32, #tpu.memory_space<vmem>>, vector<8x16xf32>,
    } else {
    }
    %c0 = arith.constant 0 : index
    %c0_1 = arith.constant 0 : index
    %c0_2 = arith.constant 0 : index
    %c0_3 = arith.constant 0 : index
    %3 = vector.load %arg2[%c0, %c0_1, %c0_2, %c0_3] : memref<1x2x8x16xf32, #tpu.memory_space<vmem>>, vector<1x2x8x16xf32>
    %4 = vector.shape_cast %3 : vector<1x2x8x16xf32> to vector<2x8x16xf32>
    %c0_4 = arith.constant 0 : index
    %c0_5 = arith.constant 0 : index
    %5 = vector.load %arg4[%c0_4, %c0_5] : memref<8x16xf32, #tpu.memory_space<vmem>>, vector<8x16xf32>
    %6 = vector.shape_cast %5 : vector<8x16xf32> to vector<1x8x16xf32>
    %7 = vector.broadcast %6 : vector<1x8x16xf32> to vector<2x8x16xf32>
    %8 = arith.mulf %4, %7 : vector<2x8x16xf32>
    %c0_6 = arith.constant 0 : index
    %c0_7 = arith.constant 0 : index
    %c0_8 = arith.constant 0 : index
    %c0_9 = arith.constant 0 : index
    %9 = vector.load %arg3[%c0_6, %c0_7, %c0_8, %c0_9] : memref<1x2x8x16xf32, #tpu.memory_space<vmem>>, vector<1x2x8x16xf32>
    %10 = vector.shape_cast %9 : vector<1x2x8x16xf32> to vector<2x8x16xf32>
    %11 = vector.shape_cast %8 : vector<2x8x16xf32> to vector<1x2x8x16xf32>
    tpu.vector_store %arg3[%c0_6, %c0_7, %c0_8, %c0_9], %11 {strides = array<i32>} : memref<1x2x8x16xf32, #tpu.memory_space<vmem>>, vector<1x2x8x16xf32>,
    return
  }
  func.func @transform_0(%arg0: i32, %arg1: i32) -> (i32, i32, i32, i32) {
    %c0_i32 = arith.constant 0 : i32
    %c0_i32_0 = arith.constant 0 : i32
    %c0_i32_1 = arith.constant 0 : i32
    return %arg1, %c0_i32, %arg0, %c0_i32_0 : i32, i32, i32, i32
  }
  func.func @transform_1(%arg0: i32, %arg1: i32) -> (i32, i32, i32, i32) {
    %c0_i32 = arith.constant 0 : i32
    %c0_i32_0 = arith.constant 0 : i32
    %c0_i32_1 = arith.constant 0 : i32
    return %arg1, %c0_i32, %arg0, %c0_i32_0 : i32, i32, i32, i32
  }
}

</mosaic_0001>

<bundles_post_ra>
// kernel: custom-call
= control target key start
LH: loop header
LB: loop body
LE: loop exit
PB: predicated region body
PF: predicated region fallthrough
CT: control target
= control target key end

     0   :  { %2 = vsyncpa [#allocation0], 0  ;;  %s61_s0 = inlined_call_operand.hbm [shape: c64[2,16,16], index: 0, kind: input, shape index: {}]   ;;  %s62_s1 = inlined_call_operand.vmem [shape: f32[2,16,16], index: 1, kind: output, shape index: {}]  }
   0x1   :  { %s3_s8 = sshll.u32 %s62_s1, 4  ;;  %s9_s11 = scalar_lea.hbm %s61_s0, 512  ;;  %s4_s8 = int_to_ptr.vmem [resolvable:$true] %s3_s8 }
   0x2   :  { %p10_p0 = scmp.ne.s32.totalorder %s61_s0, %s9_s11  ;;  %s11_s16 = scalar_lea.hbm %s61_s0, 1024 }
   0x3   :  { %p12_p1 = scmp.lt.u32.totalorder %s11_s16, %s9_s11  ;;  %p13_p2 = scmp.lt.u32.totalorder %s9_s11, %s61_s0 }
   0x5   :  { %p14_p3 = por %p13_p2, %p12_p1 }
   0x7   :  { %p15_p4 = pnand %p14_p3, %p10_p0 }
   0x9   :  { %18 = shalt.err (!%p15_p4)  }
   0xa   :  { %s19_s1 = scalar_lea.vmem %s4_s8, 512  ;;  %p24_p6 = scmp.lt.s32.totalorder %s4_s8, %s4_s8 }
   0xb   :  { %p20_p5 = scmp.ne.s32.totalorder %s4_s8, %s19_s1  ;;  %p25_p7 = scmp.lt.s32.totalorder %s19_s1, %s19_s1 }
   0xd   :  { %p26_p8 = por %p25_p7, %p24_p6 }
   0xf   :  { %p27_p9 = pnand %p26_p8, %p20_p5 }
  0x11   :  { %30 = shalt.err (!%p27_p9)  }
  0x12   :  { %6 = dma.hbm_to_vmem [thread:$0]  %s61_s0, 512, %s4_s8, [#allocation0] }
  0x13   :  { %31 = dma.done.wait [#allocation0], 512  }
  0x14   :  { %32 = vsyncadd [#allocation0], 4294966784 }
  0x15   :  { %8 = vsyncpa [#allocation0], 1 }

// kernel: custom-call.1
= control target key start
LH: loop header
LB: loop body
LE: loop exit
PB: predicated region body
PF: predicated region fallthrough
CT: control target
= control target key end

     0   :  { %s59_s0 = inlined_call_operand.hbm [shape: c64[2,16,16], index: 0, kind: input, shape index: {}]   ;;  %s60_s1 = inlined_call_operand.vmem [shape: f32[2,16,16], index: 1, kind: output, shape index: {}]  }
   0x1   :  { %s2_s8 = scalar_lea.hbm %s59_s0, 512 }
   0x2   :  { %3 = vsyncpa [#allocation0], 0  ;;  %s4_s11 = sshll.u32 %s60_s1, 4  ;;  %s34_s14 = scalar_lea.hbm %s59_s0, 1024  ;;  %s5_s11 = int_to_ptr.vmem [resolvable:$true] %s4_s11 }
   0x3   :  { %p11_p0 = scmp.ne.s32.totalorder %s2_s8, %s34_s14  ;;  %p13_p1 = scmp.lt.u32.totalorder %s2_s8, %s59_s0 }
   0x4   :  { %p14_p2 = scmp.lt.u32.totalorder %s34_s14, %s34_s14  ;;  %p16_p4 = scmp.lt.u32.totalorder %s34_s14, %s2_s8 }
   0x6   :  { %p15_p3 = por %p14_p2, %p13_p1 }
   0x8   :  { %p17_p5 = por %p16_p4, %p15_p3 }
   0xa   :  { %p18_p6 = pnand %p17_p5, %p11_p0 }
   0xc   :  { %21 = shalt.err (!%p18_p6)  }
   0xd   :  { %s22_s17 = scalar_lea.vmem %s5_s11, 512  ;;  %p27_p8 = scmp.lt.s32.totalorder %s5_s11, %s5_s11 }
   0xe   :  { %p23_p7 = scmp.ne.s32.totalorder %s5_s11, %s22_s17  ;;  %p28_p9 = scmp.lt.s32.totalorder %s22_s17, %s22_s17 }
  0x10   :  { %p29_p10 = por %p28_p9, %p27_p8 }
  0x12   :  { %p30_p11 = pnand %p29_p10, %p23_p7 }
  0x14   :  { %33 = shalt.err (!%p30_p11)  }
  0x15   :  { %7 = dma.hbm_to_vmem [thread:$0]  %s2_s8, 512, %s5_s11, [#allocation0] }
  0x16   :  { %35 = dma.done.wait [#allocation0], 512  }
  0x17   :  { %36 = vsyncadd [#allocation0], 4294966784 }
  0x18   :  { %9 = vsyncpa [#allocation0], 1 }

// kernel: custom-call.2
= control target key start
LH: loop header
LB: loop body
LE: loop exit
PB: predicated region body
PF: predicated region fallthrough
CT: control target
= control target key end

     0   :  { %s126_s0 = inlined_call_operand.vmem [shape: f32[2,16,16], index: 0, kind: input, shape index: {}]   ;;  %s127_s1 = inlined_call_operand.vmem [shape: f32[2,16,16], index: 1, kind: input, shape index: {}]   ;;  %s128_s2 = inlined_call_operand.hbm [shape: c64[2,16,16], index: 2, kind: output, shape index: {}]  }
   0x1   :  { %s87_s11 = scalar_lea.hbm %s128_s2, 512 }
   0x2   :  { %4 = vsyncpa [#allocation0], 0  ;;  %s5_s14 = sshll.u32 %s126_s0, 4  ;;  %s6_s14 = int_to_ptr.vmem [resolvable:$true] %s5_s14 }
   0x3   :  { %s18_s15 = scalar_lea.vmem %s6_s14, 512  ;;  %p23_p1 = scmp.lt.s32.totalorder %s6_s14, %s6_s14 }
   0x4   :  { %p19_p0 = scmp.ne.s32.totalorder %s6_s14, %s18_s15  ;;  %p24_p2 = scmp.lt.s32.totalorder %s18_s15, %s18_s15 }
   0x6   :  { %p25_p3 = por %p24_p2, %p23_p1 }
   0x8   :  { %p26_p4 = pnand %p25_p3, %p19_p0 }
   0xa   :  { %29 = shalt.err (!%p26_p4)  }
   0xb   :  { %p31_p5 = scmp.ne.s32.totalorder %s128_s2, %s87_s11  ;;  %s32_s0 = scalar_lea.hbm %s128_s2, 1024 }
   0xc   :  { %p33_p6 = scmp.lt.u32.totalorder %s32_s0, %s87_s11  ;;  %p34_p7 = scmp.lt.u32.totalorder %s87_s11, %s128_s2 }
   0xe   :  { %p35_p8 = por %p34_p7, %p33_p6 }
  0x10   :  { %p36_p9 = pnand %p35_p8, %p31_p5 }
  0x12   :  { %39 = shalt.err (!%p36_p9)  }
  0x13   :  { %8 = dma.vmem_to_hbm [thread:$0]  %s6_s14, 512, %s128_s2, [#allocation0] }
  0x14   :  { %65 = dma.done.wait [#allocation0], 512  }
  0x15   :  { %66 = vsyncadd [#allocation0], 4294966784 }
  0x16   :  { %10 = vsyncpa [#allocation0], 1 }
  0x17   :  { %11 = vsyncpa [#allocation1], 0  ;;  %s12_s28 = sshll.u32 %s127_s1, 4  ;;  %s13_s28 = int_to_ptr.vmem [resolvable:$true] %s12_s28 }
  0x18   :  { %s40_s29 = scalar_lea.vmem %s13_s28, 512  ;;  %p45_p11 = scmp.lt.s32.totalorder %s13_s28, %s13_s28 }
  0x19   :  { %p41_p10 = scmp.ne.s32.totalorder %s13_s28, %s40_s29  ;;  %p46_p12 = scmp.lt.s32.totalorder %s40_s29, %s40_s29 }
  0x1b   :  { %p47_p13 = por %p46_p12, %p45_p11 }
  0x1d   :  { %p48_p0 = pnand %p47_p13, %p41_p10 }
  0x1f   :  { %51 = shalt.err (!%p48_p0)  }
  0x20   :  { %p53_p1 = scmp.ne.s32.totalorder %s87_s11, %s32_s0  ;;  %p56_p2 = scmp.lt.u32.totalorder %s32_s0, %s32_s0 }
  0x22   :  { %p57_p3 = por %p56_p2, %p34_p7 }
  0x24   :  { %p59_p4 = por %p57_p3, %p33_p6 }
  0x26   :  { %p60_p5 = pnand %p59_p4, %p53_p1 }
  0x28   :  { %63 = shalt.err (!%p60_p5)  }
  0x29   :  { %15 = dma.vmem_to_hbm [thread:$0]  %s13_s28, 512, %s87_s11, [#allocation1] }
  0x2a   :  { %67 = dma.done.wait [#allocation1], 512  }
  0x2b   :  { %68 = vsyncadd [#allocation1], 4294966784 }
  0x2c   :  { %17 = vsyncpa [#allocation1], 1 }

// kernel: smooth_edge_aperture.2
= control target key start
LH: loop header
LB: loop body
LE: loop exit
PB: predicated region body
PF: predicated region fallthrough
CT: control target
= control target key end

     0   :  { %s722_s0 = inlined_call_operand.vmem [shape: f32[2,1,16,16], index: 0, kind: input, shape index: {}]   ;;  %s723_s1 = inlined_call_operand.<no memory space> [shape: f32[], index: 1, kind: input, shape index: {}]   ;;  %s724_s2 = inlined_call_operand.vmem [shape: f32[2,1,16,16], index: 2, kind: input, shape index: {}]   ;;  %s725_s3 = inlined_call_operand.vmem [shape: f32[2,2,16,16], index: 3, kind: output, shape index: {}]  }
   0x1   :  { %v610_v0 = vstv %s723_s1 }
   0x2   :  { %s612_s14 = smov 0   ;;  %s614_s15 = smov 0  }
   0x3   :  { %s616_s16 = smov 0   ;;  %s618_s17 = smov 0  }
   0x4   :  { %s620_s18 = smov 0   ;;  %s622_s19 = smov 0  }
   0x5   :  { %s624_s20 = smov 0  }
   0x6 LB: > { %s24_s1 = sadd.s32 1, %s577_s18  ;;  %s27_s21 = sadd.s32 1, %s581_s19  ;;  %s585_s20 = sphi %s624_s20, %s15_s20   ;;  %s581_s19 = sphi %s622_s19, %s732_s19   ;;  %s577_s18 = sphi %s620_s18, %s731_s18   ;;  %s573_s17 = sphi %s618_s17, %s730_s17   ;;  %s569_s16 = sphi %s616_s16, %s729_s16   ;;  %s565_s15 = sphi %s614_s15, %s728_s15   ;;  %s561_s14 = sphi %s612_s14, %s727_s14  }
   0x7   : > { %p25_p0 = scmp.ge.s32.totalorder %s24_s1, 2  ;;  %s454_s22 = sadd.s32 4294967295, %s585_s20  }
   0x8   : > { %p106_p1 = scmp.ne.s32.totalorder %s565_s15, %s561_s14  ;;  %p107_p2 = scmp.eq.s32.totalorder %s454_s22, 3 }
   0x9   : > { %s734_s1 = smov (%p25_p0, %s24_s1), 0  ;;  %s736_s21 = smov (!%p25_p0, %s27_s21), %s581_s19 }
   0xa   : > { %s91_s23 = ssub.s32 %s577_s18, %s734_s1  ;;  %p29_p3 = scmp.ge.s32.totalorder %s736_s21, 2 }
   0xb   : > { %p458_p4 = scmp.ge.s32.totalorder %s585_s20, 1  ;;  %p658_p5 = por %p107_p2, %p106_p1 }
   0xc   : > { %p163_p6 = scmp.lt.s32.totalorder %s585_s20, 5  ;;  %s738_s21 = smov (%p29_p3, %s736_s21), 0 }
   0xd   : > { %s92_s25 = ssub.s32 %s581_s19, %s738_s21  ;;  %s96_s27 = sadd.s32 1, %s565_s15 }
   0xe   : > { %p164_p7 = pnand %p458_p4, %p163_p6  ;;  %s93_s26 = sor.u32 %s92_s25, %s91_s23 }
   0xf   : > { %p94_p8 = scmp.eq.s32.totalorder %s93_s26, 0 }
  0x10   : > { %167 = sbr.rel (%p164_p7) target bundleno = 114 (0x72), region = 28 }
  0x11   : > { %s669_s28 = scalar_select %p94_p8, %s565_s15, %s96_s27  }
  0x17   : > { %s199_s29 = sand.u32 1, %s561_s14   ;;  %p205_p9 = scmp.lt.s32.totalorder %s569_s16, 1  ;;  %v233_v1 = vlaneseq }
  0x18   : > { %s459_s30 = sshll.u32 %s199_s29, 4  ;;  %p209_p10 = scmp.lt.s32.totalorder %s573_s17, 1 }
  0x19   : > { %s206_s4 = scalar_select %p205_p9, %s569_s16, 1  ;;  %v234_v2 = vand.u32 127, %v233_v1 }
  0x1a   : > { %s210_s5 = scalar_select %p209_p10, %s573_s17, 1 }
  0x1b   : > { %s460_s6 = sshll.u32 %s206_s4, 1  ;;  %vm236_vm0 = vcmp.lt.s32.totalorder %v234_v2, 16  ;;  %s686_s14 = scalar_lea.vmem [#allocation13], %s459_s30 }
  0x1c   : > { %s214_s7 = sadd.s32 %s460_s6, %s210_s5  ;;  %p464_p11 = scmp.ne.s32.totalorder %s569_s16, 0 }
  0x1d   : > { %s461_s8 = sshll.u32 %s214_s7, 3  ;;  %s465_s23 = sshll.u32 (!%p464_p11), %s573_s17, 3  ;;  %v262_v9 = vshrl.u32 (!%p464_p11), %v233_v1, 7  ;;  %v268_v10 = vcvt.s32.f32 (!%p464_p11), %v234_v2  ;;  %vm303_vm5 = vcmask (!%p464_p11), 130048  }
  0x1e   : > { %s216_s11 = scalar_lea.vmem %s722_s0, %s461_s8  ;;  %s227_s22 = scalar_lea.vmem %s724_s2, %s461_s8  ;;  %v263_v11 = vstv (!%p464_p11), %s465_s23 }
  0x1f   : > { %v231_v3 = vld [vmem:[%s216_s11] sm:$0xff]  ;;  %259 = sbr.rel (%p464_p11) target bundleno = 96 (0x60), region = 32  ;;  %v264_v12 = vadd.s32 (!%p464_p11), %v263_v11, %v262_v9  ;;  %v271_v13 = vmul.f32 (!%p464_p11), 0.13333334, %v268_v10 }
  0x20   : > { %v232_v4 = vld [vmem:[%s227_s22] sm:$0xff]  ;;  %v248_v6 = vsel %vm236_vm0, %v231_v3, %v610_v0 }
  0x21   : > { %v237_v5 = vsel %vm236_vm0, %v232_v4, %v610_v0  ;;  %v251_v8 = vmax.f32 %v610_v0, %v248_v6  ;;  %v267_v14 = vcvt.s32.f32 (!%p464_p11), %v264_v12  ;;  %v272_v15 = vadd.f32 (!%p464_p11), -1.0, %v271_v13 }
  0x22   : > { %v240_v7 = vmax.f32 %v237_v5, %v610_v0 }
  0x23   : > { %255 = vst [vmem:[#allocation14 + $0x8] sm:$0xff] %v251_v8  ;;  %v269_v16 = vmul.f32 (!%p464_p11), 0.13333334, %v267_v14  ;;  %v273_v18 = vmul.f32 (!%p464_p11), %v272_v15, %v272_v15 }
  0x24   : > { %243 = vst [vmem:[#allocation14] sm:$0xff] %v240_v7 }
  0x25   : > { %v270_v17 = vadd.f32 (!%p464_p11), -1.0, %v269_v16 }
  0x27   : > { %v274_v19 = vmul.f32 %v270_v17, %v270_v17 }
  0x29   : > { %v275_v20 = vadd.f32 %v274_v19, %v273_v18 }
  0x2b   : > { %527 = vrsqrt.f32 %v275_v20  ;;  %vm278_vm1 = vcmp.eq.f32.partialorder %v275_v20, inf  ;;  %v281_v22 = vand.u32 2147483648, %v275_v20  ;;  %vm280_vm2 = vcmp.eq.f32.partialorder %v275_v20, 0.0 }
  0x35   : > { %v528_v21 = vpop.eup %527 }
  0x36   : > { %v277_v23 = vmul.f32 %v528_v21, %v275_v20 }
  0x38   : > { %v279_v24 = vsel %vm278_vm1, %v275_v20, %v277_v23 }
  0x39   : > { %v282_v25 = vsel %vm280_vm2, %v281_v22, %v279_v24 }
  0x3a   : > { %v283_v26 = vsub.f32 0.85, %v282_v25 }
  0x3c   : > { %v284_v27 = vmul.f32 3.3333333, %v283_v26 }
  0x3e   : > { %v285_v28 = vmax.f32 %v284_v27, 0.0 }
  0x40   : > { %v286_v29 = vmin.f32 %v285_v28, 1.0 }
  0x42   : > { %v287_v30 = vsub.f32 0.0, %v286_v29  ;;  %v292_v32 = vmul.f32 %v286_v29, %v286_v29 }
  0x44   : > { %v288_v31 = vmul.f32 6.0, %v287_v30  ;;  %v293_v35 = vmul.f32 %v292_v32, %v286_v29 }
  0x46   : > { %v289_v33 = vadd.f32 15.0, %v288_v31 }
  0x48   : > { %v290_v34 = vmul.f32 %v289_v33, %v287_v30 }
  0x4a   : > { %v291_v36 = vadd.f32 10.0, %v290_v34 }
  0x4c   : > { %v294_v37 = vmul.f32 %v293_v35, %v291_v36 }
  0x4e   : > { %v295_v38 = vmax.f32 %v294_v37, 0.0 }
  0x50   : > { %529 = vrsqrt.f32 %v295_v38  ;;  %vm298_vm3 = vcmp.eq.f32.partialorder %v295_v38, inf  ;;  %v301_v40 = vand.u32 2147483648, %v295_v38  ;;  %vm300_vm4 = vcmp.eq.f32.partialorder %v295_v38, 0.0 }
  0x5a   : > { %v530_v39 = vpop.eup %529 }
  0x5b   : > { %v297_v41 = vmul.f32 %v530_v39, %v295_v38 }
  0x5d   : > { %v299_v42 = vsel %vm298_vm3, %v295_v38, %v297_v41 }
  0x5e   : > { %v302_v43 = vsel %vm300_vm4, %v301_v40, %v299_v42 }
  0x5f   : > { %304 = vst.msk [vmem:[#allocation2] sm:$0xff] %vm303_vm5, %v302_v43 }
  0x60 PF: > { %vm310_vm6 = vcmask 130048   ;;  %s467_s25 = sshll.u32 (%p658_p5), %s569_s16, 2 }
  0x61   : > { %s321_s26 = sadd.s32 (%p658_p5), %s573_s17, %s467_s25 }
  0x62   : > { %s468_s27 = sshll.u32 (%p658_p5), %s321_s26, 3 }
  0x63   : > { %319 = sbr.rel (!%p658_p5) target bundleno = 114 (0x72), region = 36  ;;  %s323_s4 = scalar_lea.vmem (%p658_p5), %s725_s3, %s468_s27 }
  0x64   : > { %v306_v45 = vld [vmem:[#allocation14 + $0x8] sm:$0xff] }
  0x65   : > { %v305_v44 = vld [vmem:[#allocation14] sm:$0xff] }
  0x66   : > { %v307_v46 = vld [vmem:[#allocation2] sm:$0xff] }
  0x67   : > { %v308_v47 = vmul.f32 %v307_v46, %v305_v44  ;;  %v309_v48 = vmul.f32 %v307_v46, %v306_v45 }
  0x69   : > { %311 = vst.msk [vmem:[%s686_s14] sm:$0xff] %vm310_vm6, %v308_v47  ;;  %312 = vst.msk [vmem:[%s686_s14 + $0x8] sm:$0xff] %vm310_vm6, %v309_v48 }
  0x70   : > { %v353_v49 = vld [vmem:[%s686_s14] sm:$0xff]  ;;  %v355_v50 = vld [vmem:[%s686_s14 + $0x8] sm:$0xff] }
  0x71   : > { %354 = vst [vmem:[%s323_s4] sm:$0xff] %v353_v49  ;;  %356 = vst [vmem:[%s323_s4 + $0x10] sm:$0xff] %v355_v50 }
  0x72 PF: > { %s15_s20 = sadd.s32 1, %s585_s20   ;;  %s727_s14 = smov %s565_s15 }
  0x73   : > { %p12_p12 = scmp.ge.s32.totalorder %s15_s20, 6   ;;  %s728_s15 = smov %s669_s28 }
  0x74   : > { %s729_s16 = smov %s577_s18  ;;  %s730_s17 = smov %s581_s19 }
  0x75   : > { %s731_s18 = smov %s734_s1  ;;  %s732_s19 = smov %s738_s21 }
  0x76   :  { %14 = sbr.rel (!%p12_p12) target bundleno = 6 (0x6), region = 104 }

</bundles_post_ra>
